<compile_context>
chip_gen: v7x
topology: tpu7x:2x2x1
jax: 0.10.0
libtpu: 0.0.40
codegen_flags: <defaults>
</compile_context>

<pallas_src>
import math
import jax
import jax.numpy as jnp
from jax.experimental import pallas as pl
from jax.experimental.pallas import tpu as pltpu


def _round_up(x, m):
    return ((x + m - 1) // m) * m


def _make_gcn_kernel(x_resident: bool, tk: int):
    """Build the (row-tile, K-tile) grid-step kernel.

    acc_ref accumulates agg = adj[rows, :] @ x over K tiles (bf16 operands,
    f32 accumulation); at the last K step the small [TM, F_in] @ [F_in, F_out]
    matmul and the bias add produce the output row tile.
    """

    def gcn_kernel(adj_ref, x_ref, w_ref, b_ref, o_ref, acc_ref):
        k = pl.program_id(1)

        @pl.when(k == 0)
        def _():
            acc_ref[...] = jnp.zeros_like(acc_ref)

        if x_resident:
            # x lives fully in VMEM; take the K-slice matching this adj tile.
            start = pl.multiple_of(k * tk, 128)
            x_tile = x_ref[pl.ds(start, tk), :]
        else:
            x_tile = x_ref[...]

        # Dominant N^2 contraction: [TM, TK] @ [TK, F_in_pad] -> f32 acc.
        acc_ref[...] += jnp.dot(
            adj_ref[...], x_tile, preferred_element_type=jnp.float32
        )

        @pl.when(k == pl.num_programs(1) - 1)
        def _():
            # (adj @ x) @ W + b  ==  adj @ (x @ W) + b   (associativity).
            out = jnp.dot(
                acc_ref[...], w_ref[...], preferred_element_type=jnp.float32
            )
            o_ref[...] = (out + b_ref[...]).astype(o_ref.dtype)

    return gcn_kernel


def graph_convolution(
    x,
    adj,
    weight,
    bias=None,
    *,
    tm=512,
    tk=512,
    x_resident_max_bytes=8 * 1024 * 1024,
):
    """Pallas GCN layer forward: adj @ (x @ weight) + bias.

    tm: output row-tile size (rounded to a multiple of 128; capped so the row
        grid keeps >= 2 tiles for v7x megacore when N allows it).
    tk: reduction (adj-column) tile size (rounded to a multiple of 128).
    """
    n, f_in = x.shape
    f_out = weight.shape[1]
    assert adj.shape == (n, n)
    assert weight.shape == (f_in, f_out)

    # --- tile selection (multiples of 128, clamped to padded N) -------------
    n128 = _round_up(n, 128)
    tm = min(max(128, _round_up(tm, 128)), n128)
    if n128 >= 256:
        # Keep at least 2 row tiles so "parallel" can shard across TCs (v7x).
        tm = min(tm, max(128, (n128 // 2) // 128 * 128))
    tk = min(max(128, _round_up(tk, 128)), n128)

    n_rows = _round_up(n, tm)        # padded adj-row / output-row extent
    n_cols = _round_up(n, tk)        # padded reduction / adj-col extent
    f_in_p = _round_up(f_in, 128)    # lane-dense accumulator
    f_out_p = _round_up(f_out, 128)  # lane-dense output / bias

    # --- zero-pad; cast the two streamed operands to bf16 -------------------
    adj_p = (
        jnp.zeros((n_rows, n_cols), jnp.bfloat16)
        .at[:n, :n]
        .set(adj.astype(jnp.bfloat16))
    )
    x_p = (
        jnp.zeros((n_cols, f_in_p), jnp.bfloat16)
        .at[:n, :f_in]
        .set(x.astype(jnp.bfloat16))
    )
    w_p = (
        jnp.zeros((f_in_p, f_out_p), jnp.float32)
        .at[:f_in, :f_out]
        .set(weight.astype(jnp.float32))
    )
    if bias is None:
        b_p = jnp.zeros((1, f_out_p), jnp.float32)
    else:
        b_p = (
            jnp.zeros((1, f_out_p), jnp.float32)
            .at[0, :f_out]
            .set(bias.astype(jnp.float32))
        )

    x_resident = x_p.size * x_p.dtype.itemsize <= x_resident_max_bytes
    if x_resident:
        # Whole x pinned in VMEM (constant index_map); sliced per K in-kernel.
        x_spec = pl.BlockSpec((n_cols, f_in_p), lambda i, k: (0, 0))
    else:
        # Streamed K-tile of x (re-streamed once per row tile).
        x_spec = pl.BlockSpec((tk, f_in_p), lambda i, k: (k, 0))

    grid = (n_rows // tm, n_cols // tk)

    out = pl.pallas_call(
        _make_gcn_kernel(x_resident, tk),
        out_shape=jax.ShapeDtypeStruct((n_rows, f_out_p), jnp.float32),
        grid=grid,
        in_specs=[
            # adj tile stream (pipelined / double-buffered), bf16.
            pl.BlockSpec((tm, tk), lambda i, k: (i, k)),
            # x: resident or streamed (see above), bf16.
            x_spec,
            # weight / bias: constant index_map -> resident in VMEM, f32.
            pl.BlockSpec((f_in_p, f_out_p), lambda i, k: (0, 0)),
            pl.BlockSpec((1, f_out_p), lambda i, k: (0, 0)),
        ],
        # Output row tile is invariant along k (reduction axis last);
        # written only at the k==last finalize.
        out_specs=pl.BlockSpec((tm, f_out_p), lambda i, k: (i, 0)),
        scratch_shapes=[pltpu.VMEM((tm, f_in_p), jnp.float32)],
        compiler_params=pltpu.CompilerParams(
            dimension_semantics=("parallel", "arbitrary"),
            vmem_limit_bytes=32 * 1024 * 1024,
        ),
    )(adj_p, x_p, w_p, b_p)

    # Strip the padding.
    return out[:n, :f_out]


if __name__ == "__main__":
    # Small, TPU-aligned shapes consistent with the module.
    N = 256        # number of graph nodes
    F_IN = 64      # in_features
    F_OUT = 128    # out_features

    key = jax.random.PRNGKey(0)
    kx, kadj, kw, kb = jax.random.split(key, 4)

    # Deterministic parameter init matching reset_parameters():
    # uniform(-stdv, stdv) with stdv = 1/sqrt(out_features).
    stdv = 1.0 / math.sqrt(F_OUT)
    weight = jax.random.uniform(kw, (F_IN, F_OUT), jnp.float32, -stdv, stdv)
    bias = jax.random.uniform(kb, (F_OUT,), jnp.float32, -stdv, stdv)

    # Example inputs: node features and a (dense) row-normalized adjacency.
    x = jax.random.uniform(kx, (N, F_IN), jnp.float32)
    adj_raw = (jax.random.uniform(kadj, (N, N), jnp.float32) > 0.9).astype(jnp.float32)
    adj_raw = adj_raw + jnp.eye(N, dtype=jnp.float32)
    adj = adj_raw / jnp.sum(adj_raw, axis=1, keepdims=True)

    out = graph_convolution(x, adj, weight, bias)
    out = jax.block_until_ready(out)

    # Reference check in plain JAX (same semantics as the torch forward).
    # adj/x streamed in bf16 (f32 accumulation) -> tolerance loosened.
    ref = adj @ (x @ weight) + bias
    assert out.shape == (N, F_OUT)
    assert jnp.allclose(out, ref, atol=3e-2, rtol=3e-2), float(
        jnp.max(jnp.abs(out - ref))
    )

    print("KERNEL_OK")
</pallas_src>

<mosaic_0001>
module attributes {stable_mosaic.version = 11 : i64} {
  func.func @gcn_kernel(%arg0: i32, %arg1: i32, %arg2: memref<128x256xbf16, #tpu.memory_space<vmem>>, %arg3: memref<256x128xbf16, #tpu.memory_space<vmem>>, %arg4: memref<128x128xf32, #tpu.memory_space<vmem>>, %arg5: memref<1x128xf32, #tpu.memory_space<vmem>>, %arg6: memref<128x128xf32, #tpu.memory_space<vmem>>, %arg7: memref<128x128xf32, #tpu.memory_space<vmem>>) attributes {dimension_semantics = [#tpu.dimension_semantics<parallel>, #tpu.dimension_semantics<arbitrary>], iteration_bounds = array<i64: 2, 1>, scalar_prefetch = 0 : i64, scratch_operands = 1 : i64, tpu.core_type = #tpu.core_type<tc>, window_params = [{transform_indices = @transform_0, window_bounds = array<i64: 128, 256>}, {pipeline_mode = #tpu.pipeline_mode<synchronous>, transform_indices = @transform_1, window_bounds = array<i64: 256, 128>}, {pipeline_mode = #tpu.pipeline_mode<synchronous>, transform_indices = @transform_2, window_bounds = array<i64: 128, 128>}, {pipeline_mode = #tpu.pipeline_mode<synchronous>, transform_indices = @transform_3, window_bounds = array<i64: 1, 128>}, {transform_indices = @transform_4, window_bounds = array<i64: 128, 128>}]} {
    %c0_i32 = arith.constant 0 : i32
    %0 = arith.cmpi eq, %arg1, %c0_i32 : i32
    %1 = arith.extui %0 : i1 to i32
    %c0_i32_0 = arith.constant 0 : i32
    %2 = arith.cmpi ne, %1, %c0_i32_0 : i32
    scf.if %2 {
      %cst_9 = arith.constant 0.000000e+00 : f32
      %15 = vector.broadcast %cst_9 : f32 to vector<128x128xf32>
      %c0_10 = arith.constant 0 : index
      %c0_11 = arith.constant 0 : index
      %16 = vector.load %arg7[%c0_10, %c0_11] : memref<128x128xf32, #tpu.memory_space<vmem>>, vector<128x128xf32>
      tpu.vector_store %arg7[%c0_10, %c0_11], %15 {strides = array<i32>} : memref<128x128xf32, #tpu.memory_space<vmem>>, vector<128x128xf32>,
    } else {
    }
    %c256_i32 = arith.constant 256 : i32
    %3 = arith.muli %arg1, %c256_i32 : i32
    %4 = tpu.assume_multiple %3, 128 : i32
    %5 = arith.index_cast %4 : i32 to index
    %c0 = arith.constant 0 : index
    %6 = vector.load %arg3[%5, %c0] : memref<256x128xbf16, #tpu.memory_space<vmem>>, vector<256x128xbf16>
    %c0_1 = arith.constant 0 : index
    %c0_2 = arith.constant 0 : index
    %7 = vector.load %arg7[%c0_1, %c0_2] : memref<128x128xf32, #tpu.memory_space<vmem>>, vector<128x128xf32>
    %c0_3 = arith.constant 0 : index
    %c0_4 = arith.constant 0 : index
    %8 = vector.load %arg2[%c0_3, %c0_4] : memref<128x256xbf16, #tpu.memory_space<vmem>>, vector<128x256xbf16>
    %cst = arith.constant dense<0.000000e+00> : vector<128x128xf32>
    %9 = tpu.matmul %8, %6, %cst {dimension_numbers = #tpu.dot_dimension_numbers<[1], [0], [0], [1], [0, 0, 1, 1], [], []>} : vector<128x256xbf16>, vector<256x128xbf16>, vector<128x128xf32> -> vector<128x128xf32>
    %10 = arith.addf %7, %9 : vector<128x128xf32>
    %c0_5 = arith.constant 0 : index
    %c0_6 = arith.constant 0 : index
    %11 = vector.load %arg7[%c0_5, %c0_6] : memref<128x128xf32, #tpu.memory_space<vmem>>, vector<128x128xf32>
    tpu.vector_store %arg7[%c0_5, %c0_6], %10 {strides = array<i32>} : memref<128x128xf32, #tpu.memory_space<vmem>>, vector<128x128xf32>,
    %c0_i32_7 = arith.constant 0 : i32
    %12 = arith.cmpi eq, %arg1, %c0_i32_7 : i32
    %13 = arith.extui %12 : i1 to i32
    %c0_i32_8 = arith.constant 0 : i32
    %14 = arith.cmpi ne, %13, %c0_i32_8 : i32
    scf.if %14 {
      %c0_9 = arith.constant 0 : index
      %c0_10 = arith.constant 0 : index
      %15 = vector.load %arg7[%c0_9, %c0_10] : memref<128x128xf32, #tpu.memory_space<vmem>>, vector<128x128xf32>
      %c0_11 = arith.constant 0 : index
      %c0_12 = arith.constant 0 : index
      %16 = vector.load %arg4[%c0_11, %c0_12] : memref<128x128xf32, #tpu.memory_space<vmem>>, vector<128x128xf32>
      %cst_13 = arith.constant dense<0.000000e+00> : vector<128x128xf32>
      %17 = tpu.matmul %15, %16, %cst_13 {dimension_numbers = #tpu.dot_dimension_numbers<[1], [0], [0], [1], [0, 0, 1, 1], [], []>} : vector<128x128xf32>, vector<128x128xf32>, vector<128x128xf32> -> vector<128x128xf32>
      %c0_14 = arith.constant 0 : index
      %c0_15 = arith.constant 0 : index
      %18 = vector.load %arg5[%c0_14, %c0_15] : memref<1x128xf32, #tpu.memory_space<vmem>>, vector<1x128xf32>
      %19 = vector.broadcast %18 : vector<1x128xf32> to vector<128x128xf32>
      %20 = arith.addf %17, %19 : vector<128x128xf32>
      %c0_16 = arith.constant 0 : index
      %c0_17 = arith.constant 0 : index
      %21 = vector.load %arg6[%c0_16, %c0_17] : memref<128x128xf32, #tpu.memory_space<vmem>>, vector<128x128xf32>
      tpu.vector_store %arg6[%c0_16, %c0_17], %20 {strides = array<i32>} : memref<128x128xf32, #tpu.memory_space<vmem>>, vector<128x128xf32>,
    } else {
    }
    return
  }
  func.func @transform_0(%arg0: i32, %arg1: i32) -> (i32, i32) {
    %c0_i32 = arith.constant 0 : i32
    return %arg0, %arg1 : i32, i32
  }
  func.func @transform_1(%arg0: i32, %arg1: i32) -> (i32, i32) {
    %c0_i32 = arith.constant 0 : i32
    %c0_i32_0 = arith.constant 0 : i32
    %c0_i32_1 = arith.constant 0 : i32
    return %c0_i32, %c0_i32_0 : i32, i32
  }
  func.func @transform_2(%arg0: i32, %arg1: i32) -> (i32, i32) {
    %c0_i32 = arith.constant 0 : i32
    %c0_i32_0 = arith.constant 0 : i32
    %c0_i32_1 = arith.constant 0 : i32
    return %c0_i32, %c0_i32_0 : i32, i32
  }
  func.func @transform_3(%arg0: i32, %arg1: i32) -> (i32, i32) {
    %c0_i32 = arith.constant 0 : i32
    %c0_i32_0 = arith.constant 0 : i32
    %c0_i32_1 = arith.constant 0 : i32
    return %c0_i32, %c0_i32_0 : i32, i32
  }
  func.func @transform_4(%arg0: i32, %arg1: i32) -> (i32, i32) {
    %c0_i32 = arith.constant 0 : i32
    %c0_i32_0 = arith.constant 0 : i32
    return %arg0, %c0_i32 : i32, i32
  }
}

</mosaic_0001>

<bundles_post_ra>
// kernel: tpu_custom_call.1
= control target key start
LH: loop header
LB: loop body
LE: loop exit
PB: predicated region body
PF: predicated region fallthrough
CT: control target
= control target key end

     0   :  { %9 = vsyncpa [#allocation4], 0  ;;  %s1865_s0 = inlined_call_operand.hbm [shape: bf16[256,256], index: 0, kind: input, shape index: {}]   ;;  %s1866_s1 = inlined_call_operand.hbm [shape: bf16[256,128], index: 1, kind: input, shape index: {}]   ;;  %s1867_s2 = inlined_call_operand.hbm [shape: f32[128,128], index: 2, kind: input, shape index: {}]   ;;  %s1868_s3 = inlined_call_operand.vmem [shape: f32[1,128], index: 3, kind: input, shape index: {}]   ;;  %s1869_s4 = inlined_call_operand.hbm [shape: f32[256,128], index: 4, kind: output, shape index: {}]  }
   0x1   :  { %11 = vsyncpa [#allocation4 + $0x1], 0 }
   0x2   :  { %12 = vsyncpa [#allocation7], 0 }
   0x3   :  { %13 = vsyncpa [#allocation5], 0 }
   0x4   :  { %15 = vsyncpa [#allocation5 + $0x1], 0  ;;  %s1560_s15 = smov 0   ;;  %s1562_s16 = smov 0  }
   0x5   :  { %s1564_s17 = smov 0   ;;  %s1566_s18 = smov 0  }
   0x6   :  { %s1568_s19 = smov 0   ;;  %s1570_s20 = smov 0  }
   0x7 LB: > { %s982_s21 = sadd.s32 4294967295, %s1523_s20   ;;  %s983_s22 = sadd.s32 4294967294, %s1523_s20   ;;  %s1523_s20 = sphi %s1570_s20, %s21_s20   ;;  %s1519_s19 = sphi %s1568_s19, %s1891_s19   ;;  %s1515_s18 = sphi %s1566_s18, %s1890_s18   ;;  %s1511_s17 = sphi %s1564_s17, %s1889_s17   ;;  %s1507_s16 = sphi %s1562_s16, %s1888_s16   ;;  %s1503_s15 = sphi %s1560_s15, %s1887_s15  }
   0x8   : > { %p55_p0 = scmp.ne.s32.totalorder %s1507_s16, %s1503_s15  ;;  %p1594_p1 = scmp.eq.s32.totalorder %s982_s21, 0 }
   0x9   : > { %p1598_p2 = scmp.eq.s32.totalorder %s982_s21, 1  ;;  %p148_p3 = scmp.eq.s32.totalorder %s983_s22, 1 }
   0xa   : > { %s1874_s23 = scalar_select %p1594_p1, 1, 0 }
   0xb   : > { %p1604_p4 = por %p1594_p1, %p55_p0  ;;  %p984_p5 = scmp.ge.s32.totalorder %s1523_s20, 1 }
   0xc   : > { %p1609_p6 = por %p148_p3, %p55_p0  ;;  %p155_p7 = scmp.lt.s32.totalorder %s1523_s20, 3 }
   0xd   : > { %s1876_s25 = scalar_select %p1604_p4, 1, 0 }
   0xe   : > { %s1877_s26 = scalar_select %p1609_p6, 1, 0 }
   0xf   : > { %p1614_p8 = pnand %p984_p5, %p155_p7  ;;  %s1525_s28 = smov [#allocation6]  }
  0x10   : > { %s167_s29 = sshll.u32 %s1525_s28, 4  ;;  %s1526_s5 = smov [#allocation8]   ;;  %s1618_s29 = int_to_ptr.vmem [resolvable:$true] %s167_s29 }
  0x11   : > { %p1234_p9 = pneg %p1614_p8  ;;  %s180_s6 = sshll.u32 %s1526_s5, 4  ;;  %s1629_s6 = int_to_ptr.vmem [resolvable:$true] %s180_s6 }
  0x12   : > { %s1351_s9 = scalar_lea.hbm %s1866_s1, 2048 }
  0x13   : > { %p1625_p11 = pnand %p1234_p9, %p1594_p1  ;;  %p1352_p12 = scmp.ne.s32.totalorder %s1866_s1, %s1351_s9 }
  0x14   : > { %p1358_p5 = scmp.lt.u32.totalorder %s1351_s9, %s1866_s1 }
  0x15   : > { %p1353_p13 = pneg %p1625_p11 }
  0x17   : > { %p1354_p0 = pnand %p1353_p13, %p1352_p12 }
  0x19   : > { %p1355_p3 = pneg %p1354_p0 }
  0x1b   : > { %p1360_p7 = pnand %p1358_p5, %p1355_p3 }
  0x1d   : > { %1363 = shalt.err (!%p1360_p7)
}
  0x1e   : > { %s1364_s14 = scalar_lea.vmem %s1618_s29, 2048  ;;  %p1372_p1 = scmp.lt.s32.totalorder %s1618_s29, %s1618_s29 }
  0x1f   : > { %p1365_p9 = scmp.ne.s32.totalorder %s1618_s29, %s1364_s14  ;;  %p1373_p12 = scmp.lt.s32.totalorder %s1364_s14, %s1364_s14 }
  0x21   : > { %p1367_p10 = pnand %p1365_p9, %p1353_p13  ;;  %p1374_p0 = por %p1373_p12, %p1372_p1 }
  0x23   : > { %p1368_p6 = pneg %p1367_p10 }
  0x25   : > { %p1375_p4 = pnand %p1374_p0, %p1368_p6 }
  0x27   : > { %1378 = shalt.err (!%p1375_p4)
}
  0x28   : > { %s1527_s21 = smov 64   ;;  %s1528_s22 = smov 4  }
  0x29   : > { %1237 = dma.hbm_to_vmem [thread:$0]  (!%p1625_p11), %s1866_s1, 2048, %s1618_s29, [#allocation7], %s1527_s21, %s1527_s21, %s1528_s22  }
  0x2a   : > { %s1379_s9 = scalar_lea.hbm %s1867_s2, 2048 }
  0x2b   : > { %p1380_p1 = scmp.ne.s32.totalorder %s1867_s2, %s1379_s9  ;;  %p1386_p10 = scmp.lt.u32.totalorder %s1379_s9, %s1867_s2 }
  0x2d   : > { %p1382_p4 = pnand %p1380_p1, %p1353_p13 }
  0x2f   : > { %p1383_p6 = pneg %p1382_p4 }
  0x31   : > { %p1388_p3 = pnand %p1386_p10, %p1383_p6 }
  0x33   : > { %1391 = shalt.err (!%p1388_p3)
}
  0x34   : > { %s1392_s29 = scalar_lea.vmem %s1629_s6, 2048  ;;  %p1400_p12 = scmp.lt.s32.totalorder %s1629_s6, %s1629_s6 }
  0x35   : > { %p1393_p5 = scmp.ne.s32.totalorder %s1629_s6, %s1392_s29  ;;  %p1401_p0 = scmp.lt.s32.totalorder %s1392_s29, %s1392_s29 }
  0x37   : > { %p1395_p7 = pnand %p1393_p5, %p1353_p13  ;;  %p1402_p1 = por %p1401_p0, %p1400_p12 }
  0x39   : > { %p1396_p9 = pneg %p1395_p7 }
  0x3b   : > { %p1403_p4 = pnand %p1402_p1, %p1396_p9 }
  0x3d   : > { %1406 = shalt.err (!%p1403_p4)
}
  0x3e   : > { %s1529_s14 = smov 128   ;;  %s1530_s21 = smov 8  }
  0x3f   : > { %1240 = dma.hbm_to_vmem [thread:$0]  (!%p1625_p11), %s1867_s2, 2048, %s1629_s6, [#allocation7], %s1529_s14, %s1529_s14, %s1530_s21  }
  0x40   : > { %s33_s5 = sadd.s32 1, %s1519_s19  ;;  %s42_s7 = sadd.s32 1, %s1511_s17 }
  0x41   : > { %p35_p13 = scmp.ge.s32.totalorder %s33_s5, 2  ;;  %p49_p6 = scmp.ne.s32.totalorder %s1511_s17, %s1507_s16 }
  0x42   : > { %p50_p10 = scmp.eq.s32.totalorder %s1523_s20, 0  ;;  %p1251_p3 = scmp.lt.s32.totalorder %s1523_s20, 2 }
  0x43   : > { %s1893_s5 = smov (%p35_p13, %s33_s5), 0  ;;  %p1696_p7 = por %p1598_p2, %p49_p6 }
  0x44   : > { %p51_p5 = por %p50_p10, %p49_p6  ;;  %s37_s8 = ssub.s32 %s1519_s19, %s1893_s5 }
  0x45   : > { %s1880_s30 = scalar_select %p1696_p7, 1, 0 }
  0x46   : > { %s197_s9 = sand.u32 1, %s1511_s17   ;;  %p40_p9 = scmp.eq.s32.totalorder %s37_s8, 0 }
  0x47   : > { %s988_s6 = sshll.u32 %s197_s9, 7  ;;  %s1036_s10 = sshll.u32 %s1519_s19, 11 }
  0x48   : > { %s1705_s11 = scalar_select %p40_p9, %s1511_s17, %s42_s7  }
  0x49   : > { %s1710_s29 = scalar_lea.hbm %s1865_s0, %s1036_s10  ;;  %s201_s24 = scalar_lea.vmem [#allocation3], %s988_s6 }
  0x4a   : > { %s211_s22 = sshll.u32 %s201_s24, 4  ;;  %p1714_p2 = pnand %p1251_p3, %p51_p5  ;;  %s1718_s22 = int_to_ptr.vmem [resolvable:$true] %s211_s22 }
  0x4b   : > { %s1720_s7 = scalar_lea.sflag [#allocation4], %s197_s9  ;;  %s1407_s8 = scalar_lea.hbm %s1710_s29, 2048 }
  0x4c   : > { %p1408_p11 = scmp.ne.s32.totalorder %s1710_s29, %s1407_s8  ;;  %p1409_p12 = pneg %p1714_p2 }
  0x4d   : > { %s1412_s12 = scalar_lea.hbm %s1865_s0, 4096  ;;  %p1413_p4 = scmp.lt.u32.totalorder %s1710_s29, %s1865_s0 }
  0x4e   : > { %p1410_p0 = pnand %p1409_p12, %p1408_p11  ;;  %p1414_p13 = scmp.lt.u32.totalorder %s1412_s12, %s1407_s8 }
  0x4f   : > { %p1416_p10 = scmp.lt.u32.totalorder %s1407_s8, %s1710_s29 }
  0x50   : > { %p1411_p1 = pneg %p1410_p0  ;;  %p1415_p6 = por %p1414_p13, %p1413_p4 }
  0x52   : > { %p1417_p3 = por %p1416_p10, %p1415_p6 }
  0x54   : > { %p1418_p5 = pnand %p1417_p3, %p1411_p1 }
  0x56   : > { %1421 = shalt.err (!%p1418_p5)
}
  0x57   : > { %s1422_s9 = scalar_lea.vmem %s1718_s22, 2048  ;;  %s1531_s6 = smov [#allocation3]  }
  0x58   : > { %p1423_p9 = scmp.ne.s32.totalorder %s1718_s22, %s1422_s9  ;;  %s1427_s10 = sshll.u32 %s1531_s6, 4  ;;  %s1428_s10 = int_to_ptr.vmem [resolvable:$false] %s1427_s10 }
  0x59   : > { %s1429_s13 = scalar_lea.vmem %s1428_s10, 4096  ;;  %p1430_p7 = scmp.lt.s32.totalorder %s1718_s22, %s1428_s10 }
  0x5a   : > { %p1425_p11 = pnand %p1423_p9, %p1409_p12  ;;  %p1431_p4 = scmp.lt.s32.totalorder %s1429_s13, %s1422_s9 }
  0x5c   : > { %p1426_p0 = pneg %p1425_p11  ;;  %p1432_p13 = por %p1431_p4, %p1430_p7 }
  0x5e   : > { %p1433_p6 = pnand %p1432_p13, %p1426_p0 }
  0x60   : > { %1436 = shalt.err (!%p1433_p6)
}
  0x61   : > { %1244 = dma.hbm_to_vmem [thread:$0]  (!%p1714_p2), %s1710_s29, 2048, %s1718_s22, %s1720_s7, %s1529_s14, %s1529_s14, %s1530_s21  }
  0x62   : > { %223 = sbr.rel (%p1614_p8) target bundleno = 645 (0x285), region = 36  ;;  %s1754_s8 = sand.u32 (!%p1614_p8), 1, %s1507_s16  }
  0x63   : > { %s993_s12 = sshll.u32 (!%p1614_p8), %s1754_s8, 7  ;;  %s226_s24 = scalar_lea.sflag (!%p1614_p8), [#allocation4], %s1754_s8 }
  0x64   : > { %s1760_s28 = scalar_lea.vmem (!%p1614_p8), [#allocation3], %s993_s12  ;;  %p1882_p7 = scmp.ne.s32.totalorder (!%p1614_p8), %s1876_s25, 0 }
  0x69   : > { %1490 = dma.done.wait (%p1882_p7), %s226_s24, 2048  }
  0x6a   : > { %1492 = vsyncadd (%p1882_p7), %s226_s24, 4294965248  ;;  %p1883_p2 = scmp.ne.s32.totalorder %s1874_s23, 0 }
  0x6c   : > { %1494 = dma.done.wait (%p1883_p2), [#allocation7], 4096  }
  0x6d   : > { %1496 = vsyncadd (%p1883_p2), [#allocation7], 4294963200  ;;  %v1311_v0 = vld [vmem:[#allocation6 + $0x40] sm:$0xff]   ;;  %v1313_v2 = vld [vmem:[#allocation6 + $0x48] sm:$0xff]   ;;  %s1791_s27 = scalar_lea.vmem [#allocation9], %s993_s12  ;;  %s1037_s14 = sshll.u32 %s1515_s18, 11 }
  0x6e   : > { %v1312_v1 = vld [vmem:[#allocation6] sm:$0xff]   ;;  %1038 = vmatprep.subr.bf16.mxu0 %v1311_v0  ;;  %v1314_v3 = vld [vmem:[#allocation6 + $0x8] sm:$0xff]   ;;  %v1315_v4 = vld [vmem:[#allocation6 + $0x50] sm:$0xff]   ;;  %s877_s21 = sshll.u32 %s1791_s27, 4  ;;  %s1812_s7 = scalar_lea.hbm %s1869_s4, %s1037_s14  ;;  %s1814_s21 = int_to_ptr.vmem [resolvable:$true] %s877_s21 }
  0x6f   : > { %1039 = vmatpush3.bf16.msra.mxu0 %v1312_v1  ;;  %v1316_v5 = vld [vmem:[#allocation6 + $0x10] sm:$0xff]   ;;  %v1317_v6 = vld [vmem:[#allocation6 + $0x58] sm:$0xff]   ;;  %v1319_v8 = vld [vmem:[#allocation6 + $0x60] sm:$0xff]   ;;  %s864_s9 = scalar_lea.sflag [#allocation5], %s1754_s8  ;;  %s1437_s6 = scalar_lea.vmem %s1814_s21, 2048 }
  0x70   : > { %1040 = vmatprep.subr.bf16.mxu0 %v1313_v2  ;;  %v1318_v7 = vld [vmem:[#allocation6 + $0x18] sm:$0xff]   ;;  %v1320_v9 = vld [vmem:[#allocation6 + $0x20] sm:$0xff]   ;;  %v1321_v10 = vld [vmem:[#allocation6 + $0x68] sm:$0xff]   ;;  %p1438_p8 = scmp.ne.s32.totalorder %s1814_s21, %s1437_s6  ;;  %p1884_p12 = scmp.ne.s32.totalorder %s1880_s30, 0 }
  0x71   : > { %v1329_v11 = vld [vmem:[%s1760_s28 + $0x4] ss:$8 sps:$4 sm:$0xff]   ;;  %v1323_v13 = vld [vmem:[#allocation6 + $0x70] sm:$0xff]   ;;  %v1325_v15 = vld [vmem:[#allocation6 + $0x78] sm:$0xff]   ;;  %s1532_s18 = smov [#allocation9]  }
  0x72   : > { %v1322_v12 = vld [vmem:[#allocation6 + $0x28] sm:$0xff]   ;;  %563 = vmatprep.mubr.bf16.mxu0 %v1329_v11  ;;  %v1324_v14 = vld [vmem:[#allocation6 + $0x30] sm:$0xff]   ;;  %v1326_v16 = vld [vmem:[#allocation6 + $0x38] sm:$0xff]   ;;  %p1439_p1 = pnand %p1438_p8, %p1884_p12  ;;  %s1441_s10 = sshll.u32 %s1532_s18, 4  ;;  %s1442_s10 = int_to_ptr.vmem [resolvable:$false] %s1441_s10 }
  0x73   : > { %1041 = vmatpush3.bf16.msra.mxu0 %v1314_v3  ;;  %v679_v17 = vld [vmem:[#allocation8] sm:$0xff]  ;;  %v680_v18 = vld [vmem:[#allocation8 + $0x8] sm:$0xff]  ;;  %v681_v19 = vld [vmem:[#allocation8 + $0x10] sm:$0xff]  ;;  %s1443_s13 = scalar_lea.vmem %s1442_s10, 4096  ;;  %p1444_p3 = scmp.lt.s32.totalorder %s1814_s21, %s1442_s10 }
  0x74   : > { %1042 = vmatprep.subr.bf16.mxu0 %v1315_v4  ;;  %v682_v20 = vld [vmem:[#allocation8 + $0x18] sm:$0xff]  ;;  %v1190_v21 = vpack.c.bf16 %v680_v18, %v679_v17  ;;  %v683_v23 = vld [vmem:[#allocation8 + $0x20] sm:$0xff]  ;;  %v684_v24 = vld [vmem:[#allocation8 + $0x28] sm:$0xff]  ;;  %p1440_p10 = pneg %p1439_p1  ;;  %p1445_p5 = scmp.lt.s32.totalorder %s1443_s13, %s1437_s6 }
  0x75   : > { %v1194_v22 = vpack.c.bf16 %v682_v20, %v681_v19  ;;  %v1327_v25 = vld [vmem:[%s1760_s28] ss:$8 sps:$4 sm:$0xff]   ;;  %v1330_v26 = vld [vmem:[%s1760_s28 + $0x14] ss:$8 sps:$4 sm:$0xff]   ;;  %v1198_v27 = vpack.c.bf16 %v684_v24, %v683_v23  ;;  %v1332_v33 = vld [vmem:[%s1760_s28 + $0x10] ss:$8 sps:$4 sm:$0xff]  }
  0x76   : > { %1191 = vmatprep.subr.bf16.mxu1 %v1190_v21  ;;  %v685_v28 = vld [vmem:[#allocation8 + $0x30] sm:$0xff]  ;;  %v686_v29 = vld [vmem:[#allocation8 + $0x38] sm:$0xff]  ;;  %v687_v31 = vld [vmem:[#allocation8 + $0x40] sm:$0xff]  ;;  %p1446_p9 = por %p1445_p5, %p1444_p3 }
  0x77   : > { %1043 = vmatpush3.bf16.msra.mxu0 %v1316_v5  ;;  %1193 = vmatpush3.bf16.msra.mxu1 %v1190_v21  ;;  %v1202_v30 = vpack.c.bf16 %v686_v29, %v685_v28  ;;  %v688_v32 = vld [vmem:[#allocation8 + $0x48] sm:$0xff]  ;;  %v689_v36 = vld [vmem:[#allocation8 + $0x50] sm:$0xff]  ;;  %v690_v37 = vld [vmem:[#allocation8 + $0x58] sm:$0xff] }
  0x78   : > { %1044 = vmatprep.subr.bf16.mxu0 %v1317_v6  ;;  %1195 = vmatprep.subr.bf16.mxu1 %v1194_v22  ;;  %v1333_v34 = vld [vmem:[%s1760_s28 + $0x24] ss:$8 sps:$4 sm:$0xff]   ;;  %v1206_v35 = vpack.c.bf16 %v688_v32, %v687_v31  ;;  %v1210_v38 = vpack.c.bf16 %v690_v37, %v689_v36  ;;  %v1335_v41 = vld [vmem:[%s1760_s28 + $0x20] ss:$8 sps:$4 sm:$0xff]   ;;  %v1336_v42 = vld [vmem:[%s1760_s28 + $0x34] ss:$8 sps:$4 sm:$0xff]   ;;  %p1447_p11 = pnand %p1446_p9, %p1440_p10 }
  0x79   : > { %v691_v39 = vld [vmem:[#allocation8 + $0x60] sm:$0xff]  ;;  %v692_v40 = vld [vmem:[#allocation8 + $0x68] sm:$0xff]  ;;  %v1338_v44 = vld [vmem:[%s1760_s28 + $0x30] ss:$8 sps:$4 sm:$0xff]  }
  0x7a   : > { %v1214_v43 = vpack.c.bf16 %v692_v40, %v691_v39  ;;  %v1339_v45 = vld [vmem:[%s1760_s28 + $0x44] ss:$8 sps:$4 sm:$0xff]   ;;  %v1341_v46 = vld [vmem:[%s1760_s28 + $0x40] ss:$8 sps:$4 sm:$0xff]   ;;  %v1342_v47 = vld [vmem:[%s1760_s28 + $0x54] ss:$8 sps:$4 sm:$0xff]  }
  0x7b   : > { %1045 = vmatpush3.bf16.msra.mxu0 %v1318_v7  ;;  %1197 = vmatpush3.bf16.msra.mxu1 %v1194_v22  ;;  %v1344_v48 = vld [vmem:[%s1760_s28 + $0x50] ss:$8 sps:$4 sm:$0xff]   ;;  %v1345_v49 = vld [vmem:[%s1760_s28 + $0x64] ss:$8 sps:$4 sm:$0xff]   ;;  %v1347_v50 = vld [vmem:[%s1760_s28 + $0x60] ss:$8 sps:$4 sm:$0xff]  }
  0x7c   : > { %1046 = vmatprep.subr.bf16.mxu0 %v1319_v8  ;;  %1199 = vmatprep.subr.bf16.mxu1 %v1198_v27  ;;  %v1348_v51 = vld [vmem:[%s1760_s28 + $0x74] ss:$8 sps:$4 sm:$0xff]   ;;  %v1350_v52 = vld [vmem:[%s1760_s28 + $0x70] ss:$8 sps:$4 sm:$0xff]   ;;  %v1029_v40 = vld [vmem:[%s1868_s3] ss:$0 sm:$0xff] }
  0x7d   : > { %v693_v53 = vld [vmem:[#allocation8 + $0x70] sm:$0xff]  ;;  %v694_v54 = vld [vmem:[#allocation8 + $0x78] sm:$0xff] }
  0x7e   : > { %v1218_v55 = vpack.c.bf16 %v694_v54, %v693_v53 }
  0x7f   : > { %1047 = vmatpush3.bf16.msra.mxu0 %v1320_v9  ;;  %1201 = vmatpush3.bf16.msra.mxu1 %v1198_v27 }
  0x80   : > { %1048 = vmatprep.subr.bf16.mxu0 %v1321_v10  ;;  %1203 = vmatprep.subr.bf16.mxu1 %v1202_v30 }
  0x83   : > { %1049 = vmatpush3.bf16.msra.mxu0 %v1322_v12  ;;  %1205 = vmatpush3.bf16.msra.mxu1 %v1202_v30 }
  0x84   : > { %1050 = vmatprep.subr.bf16.mxu0 %v1323_v13  ;;  %1207 = vmatprep.subr.bf16.mxu1 %v1206_v35 }
  0x87   : > { %1051 = vmatpush3.bf16.msra.mxu0 %v1324_v14  ;;  %1209 = vmatpush3.bf16.msra.mxu1 %v1206_v35 }
  0x88   : > { %1052 = vmatprep.subr.bf16.mxu0 %v1325_v15  ;;  %1211 = vmatprep.subr.bf16.mxu1 %v1210_v38 }
  0x8b   : > { %1053 = vmatpush3.bf16.msra.mxu0 %v1326_v16  ;;  %1213 = vmatpush3.bf16.msra.mxu1 %v1210_v38 }
  0x8c   : > { %1215 = vmatprep.subr.bf16.mxu1 %v1214_v43 }
  0x8e   : > { %564 = vmatmul.mubr.bf16.vlgmr.msra.gmra.mrb[0].mxu0 %v1327_v25 }
  0x8f   : > { %571 = vmatprep.mubr.bf16.mxu0 %v1330_v26  ;;  %1217 = vmatpush3.bf16.msra.mxu1 %v1214_v43 }
  0x90   : > { %1219 = vmatprep.subr.bf16.mxu1 %v1218_v55 }
  0x93   : > { %1221 = vmatpush3.bf16.msra.mxu1 %v1218_v55 }
  0x96   : > { %572 = vmatmul.mubr.bf16.gmra.mrb[4].mxu0 %v1332_v33 }
  0x97   : > { %579 = vmatprep.mubr.bf16.mxu0 %v1333_v34 }
  0x9e   : > { %580 = vmatmul.mubr.bf16.gmra.mrb[8].mxu0 %v1335_v41 }
  0x9f   : > { %587 = vmatprep.mubr.bf16.mxu0 %v1336_v42 }
  0xa6   : > { %588 = vmatmul.mubr.bf16.gmra.mrb[12].mxu0 %v1338_v44 }
  0xa7   : > { %595 = vmatprep.mubr.bf16.mxu0 %v1339_v45 }
  0xae   : > { %596 = vmatmul.mubr.bf16.gmra.mrb[16].mxu0 %v1341_v46 }
  0xaf   : > { %603 = vmatprep.mubr.bf16.mxu0 %v1342_v47 }
  0xb6   : > { %604 = vmatmul.mubr.bf16.gmra.mrb[20].mxu0 %v1344_v48 }
  0xb7   : > { %611 = vmatprep.mubr.bf16.mxu0 %v1345_v49 }
  0xbe   : > { %612 = vmatmul.mubr.bf16.gmra.mrb[24].mxu0 %v1347_v50 }
  0xbf   : > { %619 = vmatprep.mubr.bf16.mxu0 %v1348_v51 }
  0xc6   : > { %620 = vmatmul.mubr.bf16.gmra.mrb[28].mxu0 %v1350_v52 }
 0x161   : > { %v1054_v56 = vpop.f32.mrb[0].mxu0 }
 0x162   : > { %v1055_v57 = vpop.f32.mrb[1].mxu0 }
 0x163   : > { %v1057_v58 = vpop.f32.mrb[2].mxu0  ;;  %v1056_v59 = vadd.f32 %v1055_v57, %v1054_v56 }
 0x164   : > { %v1058_v60 = vpop.f32.mrb[3].mxu0 }
 0x165   : > { %v1059_v61 = vadd.f32 %v1058_v60, %v1057_v58  ;;  %1166 = vmatprep.mubr.f32.mxu1 %v1056_v59 }
 0x167   : > { %1167 = vmatmul.mubr.f32.vlgmr.msra.gmra.mrb[0].mxu1 %v1059_v61 }
 0x169   : > { %v1060_v62 = vpop.f32.mrb[4].mxu0 }
 0x16a   : > { %v1061_v63 = vpop.f32.mrb[5].mxu0 }
 0x16b   : > { %v1062_v0 = vadd.f32 %v1061_v63, %v1060_v62  ;;  %v1063_v1 = vpop.f32.mrb[6].mxu0 }
 0x16c   : > { %v1064_v2 = vpop.f32.mrb[7].mxu0 }
 0x16d   : > { %v1065_v3 = vadd.f32 %v1064_v2, %v1063_v1  ;;  %1169 = vmatprep.mubr.f32.mxu1 %v1062_v0 }
 0x16f   : > { %1170 = vmatmul.mubr.f32.gmra.mrb[2].mxu1 %v1065_v3 }
 0x171   : > { %v1066_v4 = vpop.f32.mrb[8].mxu0 }
 0x172   : > { %v1067_v5 = vpop.f32.mrb[9].mxu0 }
 0x173   : > { %v1068_v6 = vadd.f32 %v1067_v5, %v1066_v4  ;;  %v1069_v7 = vpop.f32.mrb[10].mxu0 }
 0x174   : > { %v1070_v8 = vpop.f32.mrb[11].mxu0 }
 0x175   : > { %v1071_v9 = vadd.f32 %v1070_v8, %v1069_v7  ;;  %1172 = vmatprep.mubr.f32.mxu1 %v1068_v6 }
 0x177   : > { %1173 = vmatmul.mubr.f32.gmra.mrb[4].mxu1 %v1071_v9 }
 0x179   : > { %v1072_v10 = vpop.f32.mrb[12].mxu0 }
 0x17a   : > { %v1073_v11 = vpop.f32.mrb[13].mxu0 }
 0x17b   : > { %v1074_v12 = vadd.f32 %v1073_v11, %v1072_v10  ;;  %v1075_v13 = vpop.f32.mrb[14].mxu0 }
 0x17c   : > { %v1076_v14 = vpop.f32.mrb[15].mxu0 }
 0x17d   : > { %v1077_v15 = vadd.f32 %v1076_v14, %v1075_v13  ;;  %1175 = vmatprep.mubr.f32.mxu1 %v1074_v12 }
 0x17f   : > { %1176 = vmatmul.mubr.f32.gmra.mrb[6].mxu1 %v1077_v15 }
 0x181   : > { %v1078_v16 = vpop.f32.mrb[16].mxu0 }
 0x182   : > { %v1079_v17 = vpop.f32.mrb[17].mxu0 }
 0x183   : > { %v1080_v18 = vadd.f32 %v1079_v17, %v1078_v16  ;;  %v1081_v19 = vpop.f32.mrb[18].mxu0 }
 0x184   : > { %v1082_v20 = vpop.f32.mrb[19].mxu0 }
 0x185   : > { %v1083_v21 = vadd.f32 %v1082_v20, %v1081_v19  ;;  %1178 = vmatprep.mubr.f32.mxu1 %v1080_v18 }
 0x187   : > { %1179 = vmatmul.mubr.f32.gmra.mrb[8].mxu1 %v1083_v21 }
 0x189   : > { %v1084_v22 = vpop.f32.mrb[20].mxu0 }
 0x18a   : > { %v1085_v23 = vpop.f32.mrb[21].mxu0 }
 0x18b   : > { %v1086_v24 = vadd.f32 %v1085_v23, %v1084_v22  ;;  %v1087_v25 = vpop.f32.mrb[22].mxu0 }
 0x18c   : > { %v1088_v26 = vpop.f32.mrb[23].mxu0 }
 0x18d   : > { %v1089_v27 = vadd.f32 %v1088_v26, %v1087_v25  ;;  %1181 = vmatprep.mubr.f32.mxu1 %v1086_v24 }
 0x18f   : > { %1182 = vmatmul.mubr.f32.gmra.mrb[10].mxu1 %v1089_v27 }
 0x191   : > { %v1090_v28 = vpop.f32.mrb[24].mxu0 }
 0x192   : > { %v1091_v29 = vpop.f32.mrb[25].mxu0 }
 0x193   : > { %v1092_v30 = vadd.f32 %v1091_v29, %v1090_v28  ;;  %v1093_v31 = vpop.f32.mrb[26].mxu0 }
 0x194   : > { %v1094_v32 = vpop.f32.mrb[27].mxu0 }
 0x195   : > { %v1095_v33 = vadd.f32 %v1094_v32, %v1093_v31  ;;  %1184 = vmatprep.mubr.f32.mxu1 %v1092_v30 }
 0x197   : > { %1185 = vmatmul.mubr.f32.gmra.mrb[12].mxu1 %v1095_v33 }
 0x199   : > { %v1096_v34 = vpop.f32.mrb[28].mxu0 }
 0x19a   : > { %v1097_v35 = vpop.f32.mrb[29].mxu0 }
 0x19b   : > { %v1098_v36 = vadd.f32 %v1097_v35, %v1096_v34  ;;  %v1099_v37 = vpop.f32.mrb[30].mxu0 }
 0x19c   : > { %v1100_v38 = vpop.f32.mrb[31].mxu0 }
 0x19d   : > { %v1101_v39 = vadd.f32 %v1100_v38, %v1099_v37  ;;  %1187 = vmatprep.mubr.f32.mxu1 %v1098_v36 }
 0x19f   : > { %1188 = vmatmul.mubr.f32.gmra.mrb[14].mxu1 %v1101_v39 }
 0x23a   : > { %v1168_v41 = vpop.f32.mrb[0].mxu1 }
 0x23b   : > { %v774_v42 = vadd.f32 %v1168_v41, %v1029_v40  ;;  %v768_v43 = vpop.f32.mrb[1].mxu1 }
 0x23c   : > { %v769_v44 = vadd.f32 %v1029_v40, %v768_v43 }
 0x23d   : > { %848 = vst [vmem:[%s1791_s27 + $0x8] sm:$0xff] %v774_v42 }
 0x23e   : > { %847 = vst [vmem:[%s1791_s27] sm:$0xff] %v769_v44 }
 0x242   : > { %v1171_v45 = vpop.f32.mrb[2].mxu1 }
 0x243   : > { %v784_v46 = vadd.f32 %v1171_v45, %v1029_v40  ;;  %v778_v47 = vpop.f32.mrb[3].mxu1 }
 0x244   : > { %v779_v48 = vadd.f32 %v1029_v40, %v778_v47 }
 0x245   : > { %850 = vst [vmem:[%s1791_s27 + $0x18] sm:$0xff] %v784_v46 }
 0x246   : > { %849 = vst [vmem:[%s1791_s27 + $0x10] sm:$0xff] %v779_v48 }
 0x24a   : > { %v1174_v49 = vpop.f32.mrb[4].mxu1 }
 0x24b   : > { %v794_v50 = vadd.f32 %v1174_v49, %v1029_v40  ;;  %v788_v51 = vpop.f32.mrb[5].mxu1 }
 0x24c   : > { %v789_v52 = vadd.f32 %v1029_v40, %v788_v51 }
 0x24d   : > { %852 = vst [vmem:[%s1791_s27 + $0x28] sm:$0xff] %v794_v50 }
 0x24e   : > { %851 = vst [vmem:[%s1791_s27 + $0x20] sm:$0xff] %v789_v52 }
 0x252   : > { %v1177_v53 = vpop.f32.mrb[6].mxu1 }
 0x253   : > { %v804_v54 = vadd.f32 %v1177_v53, %v1029_v40  ;;  %v798_v55 = vpop.f32.mrb[7].mxu1 }
 0x254   : > { %v799_v56 = vadd.f32 %v1029_v40, %v798_v55 }
 0x255   : > { %854 = vst [vmem:[%s1791_s27 + $0x38] sm:$0xff] %v804_v54 }
 0x256   : > { %853 = vst [vmem:[%s1791_s27 + $0x30] sm:$0xff] %v799_v56 }
 0x25a   : > { %v1180_v57 = vpop.f32.mrb[8].mxu1 }
 0x25b   : > { %v814_v58 = vadd.f32 %v1180_v57, %v1029_v40  ;;  %v808_v59 = vpop.f32.mrb[9].mxu1 }
 0x25c   : > { %v809_v60 = vadd.f32 %v1029_v40, %v808_v59 }
 0x25d   : > { %856 = vst [vmem:[%s1791_s27 + $0x48] sm:$0xff] %v814_v58 }
 0x25e   : > { %855 = vst [vmem:[%s1791_s27 + $0x40] sm:$0xff] %v809_v60 }
 0x262   : > { %v1183_v61 = vpop.f32.mrb[10].mxu1 }
 0x263   : > { %v824_v62 = vadd.f32 %v1183_v61, %v1029_v40  ;;  %v818_v63 = vpop.f32.mrb[11].mxu1 }
 0x264   : > { %v819_v0 = vadd.f32 %v1029_v40, %v818_v63 }
 0x265   : > { %858 = vst [vmem:[%s1791_s27 + $0x58] sm:$0xff] %v824_v62 }
 0x266   : > { %857 = vst [vmem:[%s1791_s27 + $0x50] sm:$0xff] %v819_v0 }
 0x26a   : > { %v1186_v1 = vpop.f32.mrb[12].mxu1 }
 0x26b   : > { %v834_v2 = vadd.f32 %v1186_v1, %v1029_v40  ;;  %v828_v3 = vpop.f32.mrb[13].mxu1 }
 0x26c   : > { %v829_v4 = vadd.f32 %v1029_v40, %v828_v3 }
 0x26d   : > { %860 = vst [vmem:[%s1791_s27 + $0x68] sm:$0xff] %v834_v2 }
 0x26e   : > { %859 = vst [vmem:[%s1791_s27 + $0x60] sm:$0xff] %v829_v4 }
 0x272   : > { %v1189_v5 = vpop.f32.mrb[14].mxu1 }
 0x273   : > { %v844_v6 = vadd.f32 %v1189_v5, %v1029_v40  ;;  %v838_v7 = vpop.f32.mrb[15].mxu1 }
 0x274   : > { %v839_v8 = vadd.f32 %v1029_v40, %v838_v7 }
 0x275   : > { %862 = vst [vmem:[%s1791_s27 + $0x78] sm:$0xff] %v844_v6 }
 0x276   : > { %861 = vst [vmem:[%s1791_s27 + $0x70] sm:$0xff] %v839_v8 }
 0x277   : > { %1450 = shalt.err (!%p1447_p11)
}
 0x278   : > { %s1451_s12 = scalar_lea.hbm %s1812_s7, 2048  ;;  %s1455_s23 = scalar_lea.hbm %s1869_s4, 4096 }
 0x279   : > { %p1452_p0 = scmp.ne.s32.totalorder %s1812_s7, %s1451_s12  ;;  %p1456_p6 = scmp.lt.u32.totalorder %s1812_s7, %s1869_s4 }
 0x27a   : > { %p1457_p7 = scmp.lt.u32.totalorder %s1455_s23, %s1451_s12  ;;  %p1459_p8 = scmp.lt.u32.totalorder %s1451_s12, %s1812_s7 }
 0x27b   : > { %p1453_p4 = pnand %p1452_p0, %p1884_p12 }
 0x27c   : > { %p1458_p2 = por %p1457_p7, %p1456_p6 }
 0x27d   : > { %p1454_p13 = pneg %p1453_p4 }
 0x27e   : > { %p1460_p1 = por %p1459_p8, %p1458_p2 }
 0x280   : > { %p1461_p10 = pnand %p1460_p1, %p1454_p13 }
 0x282   : > { %1464 = shalt.err (!%p1461_p10)
}
 0x283   : > { %s1533_s14 = smov 128   ;;  %s1534_s29 = smov 8  }
 0x284   : > { %1232 = dma.vmem_to_hbm [thread:$0]  (%p1884_p12), %s1814_s21, 2048, %s1812_s7, %s864_s9, %s1533_s14, %s1533_s14, %s1534_s29  }
 0x285 PF: > { %s892_s22 = sand.u32 1, %s1503_s15   ;;  %p1885_p3 = scmp.ne.s32.totalorder %s1877_s26, 0 }
 0x286   : > { %p1886_p5 = scmp.ge.s32.totalorder %s1523_s20, 2  ;;  %s893_s6 = scalar_lea.sflag [#allocation5], %s892_s22 }
 0x288   : > { %p1246_p9 = pnand %p1886_p5, %p1885_p3 }
 0x28a   : > { %1498 = dma.done.wait (!%p1246_p9), %s893_s6, 2048  }
 0x28b   : > { %1500 = vsyncadd (!%p1246_p9), %s893_s6, 4294965248  ;;  %s21_s20 = sadd.s32 1, %s1523_s20   ;;  %s1887_s15 = smov %s1507_s16 }
 0x28c   : > { %p18_p11 = scmp.ge.s32.totalorder %s21_s20, 4   ;;  %s1888_s16 = smov %s1511_s17 }
 0x28d   : > { %s1889_s17 = smov %s1705_s11  ;;  %s1890_s18 = smov %s1519_s19 }
 0x28e   : > { %s1891_s19 = smov %s1893_s5  ;;  %20 = sbr.rel (!%p18_p11) target bundleno = 7 (0x7), region = 98 }
 0x295   :  { %898 = vsyncpa [#allocation4], 1 }
 0x296   :  { %900 = vsyncpa [#allocation4 + $0x1], 1 }
 0x297   :  { %901 = vsyncpa [#allocation7], 1 }
 0x298   :  { %902 = vsyncpa [#allocation5], 1 }
 0x299   :  { %904 = vsyncpa [#allocation5 + $0x1], 1 }

</bundles_post_ra>
